<compile_context>
chip_gen: v7x
topology: tpu7x:2x2x1
jax: 0.10.0
libtpu: 0.0.40
codegen_flags: <defaults>
</compile_context>

<pallas_src>
import functools

import jax
import jax.numpy as jnp
from jax.experimental import pallas as pl
from jax.experimental.pallas import tpu as pltpu

_NEG_BIG = -1e30     # finite "-inf" sentinel (avoids inf-inf / 0*inf NaNs on empty tiles)


def _round_up(a, b):
    return ((a + b - 1) // b) * b


def _tpu_config():
    """(num_cores, tile_cap, vmem_limit_bytes) tuned per TPU generation."""
    try:
        kind = jax.devices()[0].device_kind.lower()
    except Exception:
        kind = ""
    if "v7" in kind or "tpu7" in kind:
        # 2 TensorCores/chip, 64 MiB physical VMEM: 3 inputs x 2 buffers x
        # tile_n x 128 lanes x 4 B  ->  keep tile_n <= 8192 under 32 MiB scoped.
        return 2, 8192, 32 * 1024 * 1024
    if any(s in kind for s in ("v6", "v5e", "v5 lite", "v5lite")):
        # Single TensorCore, 128 MiB VMEM: big resident tiles are free.
        return 1, 16384, 64 * 1024 * 1024
    # Conservative default for anything else (v4 / v5p / unknown).
    return 1, 4096, 32 * 1024 * 1024


def _mine_kernel(n_valid, tile_n, tiles_per_core,
                 x_ref, y_ref, ys_ref, w1x_ref, w1y_ref, b1_ref, w2r_ref,
                 h0sum_out, m_out, se_out,
                 h0sum_acc, m_acc, se_acc):
    c = pl.program_id(0)   # core / batch-half index ("parallel")
    i = pl.program_id(1)   # row-tile index within this half ("arbitrary")

    @pl.when(i == 0)
    def _init():
        h0sum_acc[...] = jnp.zeros_like(h0sum_acc)
        m_acc[...] = jnp.full_like(m_acc, _NEG_BIG)
        se_acc[...] = jnp.zeros_like(se_acc)

    # Validity mask for rows past the true batch size.  There is no wrapper
    # padding anymore: fringe rows hold unspecified data and every use below
    # goes through a select on `valid`, so garbage never reaches accumulators.
    row = jax.lax.broadcasted_iota(jnp.int32, (tile_n, 1), 0)
    global_row = (c * tiles_per_core + i) * tile_n + row
    valid = global_row < n_valid                                     # (tile_n, 1)

    # First layer: compute x @ W1x once, reuse for both branches.
    xw = jnp.dot(x_ref[...], w1x_ref[...], preferred_element_type=jnp.float32)
    b1 = b1_ref[...]                                                 # (1, H)
    h0 = jnp.maximum(
        xw + jnp.dot(y_ref[...], w1y_ref[...],
                     preferred_element_type=jnp.float32) + b1, 0.0)
    h1 = jnp.maximum(
        xw + jnp.dot(ys_ref[...], w1y_ref[...],
                     preferred_element_type=jnp.float32) + b1, 0.0)

    # T0 branch: second layer is linear, so only sum_rows(h0) is needed.
    h0sum_acc[...] += jnp.sum(jnp.where(valid, h0, 0.0), axis=0, keepdims=True)

    # T1 branch: per-row T value via VPU multiply + lane reduce (no (H,1) matmul).
    # b2 is folded out here (log-mean-exp is shift invariant); re-added in wrapper.
    t1 = jnp.sum(h1 * w2r_ref[...], axis=1, keepdims=True)           # (tile_n, 1)
    t1m = jnp.where(valid, t1, _NEG_BIG)

    # Online (streaming) log-mean-exp accumulation with running max.
    m_old = m_acc[...]                                               # (1, 1)
    m_new = jnp.maximum(m_old, jnp.max(t1m, axis=0, keepdims=True))  # (1, 1)
    scale = jnp.exp(m_old - m_new)
    block_se = jnp.sum(jnp.where(valid, jnp.exp(t1 - m_new), 0.0),
                       axis=0, keepdims=True)
    se_acc[...] = se_acc[...] * scale + block_se
    m_acc[...] = m_new

    @pl.when(i == tiles_per_core - 1)
    def _finalize():
        h0sum_out[0] = h0sum_acc[...]
        m_out[0] = m_acc[...]
        se_out[0] = se_acc[...]


def mine_forward(x_samples, y_samples, params, shuffle_key):
    """Pallas implementation of MINE.forward.

    x_samples: (N, x_dim) float32
    y_samples: (N, y_dim) float32
    params: dict with w1 (x_dim+y_dim, H), b1 (H,), w2 (H, 1), b2 (1,)
    shuffle_key: PRNG key for the random index (torch.randint analog)
    """
    n, x_dim = x_samples.shape
    y_dim = y_samples.shape[1]
    hidden = params["w1"].shape[1]

    num_cores, tile_cap, vmem_limit = _tpu_config()

    # torch.randint(sample_size, (sample_size,)) — sampling WITH replacement.
    random_index = jax.random.randint(shuffle_key, (n,), 0, n)
    # TODO(synk): fuse this gather into the kernel (scalar-prefetched indices +
    # resident-y jnp.take for small N, or chunked manual DMA gather for large N)
    # so y_shuffle never round-trips through HBM.
    y_shuffle = y_samples[random_index]

    x_f = x_samples.astype(jnp.float32)
    y_f = y_samples.astype(jnp.float32)
    ys_f = y_shuffle.astype(jnp.float32)

    # Row tiling: largest tile that fits the per-generation VMEM budget.
    # No padding copies — ragged fringe is masked in-kernel.
    rows_per_core = pl.cdiv(n, num_cores)
    tile_n = max(8, min(tile_cap, _round_up(rows_per_core, 8)))
    tiles_per_core = pl.cdiv(rows_per_core, tile_n)
    max_blk = pl.cdiv(n, tile_n) - 1     # clamp fully-OOB blocks back in bounds

    w1 = params["w1"].astype(jnp.float32)
    w1x = w1[:x_dim]                                   # (x_dim, H)
    w1y = w1[x_dim:]                                   # (y_dim, H)
    b1 = params["b1"].reshape(1, hidden).astype(jnp.float32)
    w2 = params["w2"].astype(jnp.float32)              # (H, 1)
    w2_row = w2.reshape(1, hidden)                     # (1, H) for VPU reduce
    b2 = params["b2"].reshape(()).astype(jnp.float32)  # scalar, wrapper-only

    kernel = functools.partial(_mine_kernel, n, tile_n, tiles_per_core)

    def row_map(c, i):
        return (jnp.minimum(c * tiles_per_core + i, max_blk), 0)

    const_map = lambda c, i: (0, 0)
    core_map = lambda c, i: (c, 0, 0)

    h0sum_p, m_p, se_p = pl.pallas_call(
        kernel,
        grid=(num_cores, tiles_per_core),
        in_specs=[
            pl.BlockSpec((tile_n, x_dim), row_map),      # x tile
            pl.BlockSpec((tile_n, y_dim), row_map),      # y tile
            pl.BlockSpec((tile_n, y_dim), row_map),      # y_shuffle tile
            pl.BlockSpec((x_dim, hidden), const_map),    # W1x (resident)
            pl.BlockSpec((y_dim, hidden), const_map),    # W1y (resident)
            pl.BlockSpec((1, hidden), const_map),        # b1 row
            pl.BlockSpec((1, hidden), const_map),        # w2 row
        ],
        out_specs=[
            pl.BlockSpec((1, 1, hidden), core_map),      # per-core sum_rows(h0)
            pl.BlockSpec((1, 1, 1), core_map),           # per-core running max
            pl.BlockSpec((1, 1, 1), core_map),           # per-core sum exp(t1-m)
        ],
        out_shape=[
            jax.ShapeDtypeStruct((num_cores, 1, hidden), jnp.float32),
            jax.ShapeDtypeStruct((num_cores, 1, 1), jnp.float32),
            jax.ShapeDtypeStruct((num_cores, 1, 1), jnp.float32),
        ],
        scratch_shapes=[
            pltpu.VMEM((1, hidden), jnp.float32),        # h0 row-sum accumulator
            pltpu.VMEM((1, 1), jnp.float32),             # running max
            pltpu.VMEM((1, 1), jnp.float32),             # running sum of exp
        ],
        compiler_params=pltpu.CompilerParams(
            dimension_semantics=("parallel", "arbitrary"),
            vmem_limit_bytes=vmem_limit,
        ),
    )(x_f, y_f, ys_f, w1x, w1y, b1, w2_row)

    # Tiny scalar epilogue: combine per-core partials and finish the reductions.
    sum_h0 = jnp.sum(h0sum_p, axis=(0, 1))                       # (H,)
    mean_t0 = jnp.dot(sum_h0, w2[:, 0]) / n + b2
    m_parts = m_p.reshape(num_cores)
    se_parts = se_p.reshape(num_cores)
    m_tot = jnp.max(m_parts)
    sum_exp = jnp.sum(se_parts * jnp.exp(m_parts - m_tot))
    # b2 was dropped in-kernel; log-mean-exp is shift invariant so it is
    # re-added here (it cancels against mean_t0's b2, exactly as in the reference).
    log_mean_exp = b2 + m_tot + jnp.log(sum_exp) - jnp.log(jnp.float32(n))
    return mean_t0 - log_mean_exp


def init_mine_params(key, x_dim, y_dim, hidden_size):
    """Deterministic parameter init (PyTorch-Linear-style uniform bounds)."""
    d = x_dim + y_dim
    k1, k2, k3, k4 = jax.random.split(key, 4)
    bound1 = 1.0 / jnp.sqrt(d)
    bound2 = 1.0 / jnp.sqrt(hidden_size)
    return {
        "w1": jax.random.uniform(k1, (d, hidden_size), jnp.float32, -bound1, bound1),
        "b1": jax.random.uniform(k2, (hidden_size,), jnp.float32, -bound1, bound1),
        "w2": jax.random.uniform(k3, (hidden_size, 1), jnp.float32, -bound2, bound2),
        "b2": jax.random.uniform(k4, (1,), jnp.float32, -bound2, bound2),
    }


def mine_forward_ref(x_samples, y_samples, params, shuffle_key):
    """Pure-JAX reference of the same forward (same RNG for shuffle)."""
    n = y_samples.shape[0]
    random_index = jax.random.randint(shuffle_key, (n,), 0, n)
    y_shuffle = y_samples[random_index]

    def T(z):
        h = jnp.maximum(z @ params["w1"] + params["b1"], 0.0)
        return h @ params["w2"] + params["b2"]

    t0 = T(jnp.concatenate([x_samples, y_samples], axis=-1))
    t1 = T(jnp.concatenate([x_samples, y_shuffle], axis=-1))
    return jnp.mean(t0) - jnp.log(jnp.mean(jnp.exp(t1)))


if __name__ == "__main__":
    # Small shapes consistent with the module: x_dim=16, y_dim=16, hidden=32.
    X_DIM, Y_DIM, HIDDEN = 16, 16, 32

    root = jax.random.PRNGKey(0)
    kp = jax.random.fold_in(root, 1)
    params = init_mine_params(kp, X_DIM, Y_DIM, HIDDEN)

    # Two batch sizes: a tiny exact-tile one and a ragged (non multiple of 8)
    # one that exercises the no-padding fringe-mask path.
    for case, N in enumerate((8, 50)):
        kx = jax.random.fold_in(root, 10 + case)
        ky = jax.random.fold_in(root, 20 + case)
        ks = jax.random.fold_in(root, 30 + case)

        x_samples = jax.random.normal(kx, (N, X_DIM), dtype=jnp.float32)
        y_samples = jax.random.normal(ky, (N, Y_DIM), dtype=jnp.float32)

        lb = jax.block_until_ready(mine_forward(x_samples, y_samples, params, ks))
        lb_ref = jax.block_until_ready(
            mine_forward_ref(x_samples, y_samples, params, ks))
        assert jnp.allclose(lb, lb_ref, atol=1e-4, rtol=1e-4), (N, lb, lb_ref)

    print("KERNEL_OK")
</pallas_src>

<mosaic_0001>
module attributes {stable_mosaic.version = 11 : i64} {
  func.func @_mine_kernel(%arg0: i32, %arg1: i32, %arg2: memref<8x16xf32, #tpu.memory_space<vmem>>, %arg3: memref<8x16xf32, #tpu.memory_space<vmem>>, %arg4: memref<8x16xf32, #tpu.memory_space<vmem>>, %arg5: memref<16x32xf32, #tpu.memory_space<vmem>>, %arg6: memref<16x32xf32, #tpu.memory_space<vmem>>, %arg7: memref<1x32xf32, #tpu.memory_space<vmem>>, %arg8: memref<1x32xf32, #tpu.memory_space<vmem>>, %arg9: memref<1x1x32xf32, #tpu.memory_space<vmem>>, %arg10: memref<1x1x1xf32, #tpu.memory_space<vmem>>, %arg11: memref<1x1x1xf32, #tpu.memory_space<vmem>>, %arg12: memref<1x32xf32, #tpu.memory_space<vmem>>, %arg13: memref<1x1xf32, #tpu.memory_space<vmem>>, %arg14: memref<1x1xf32, #tpu.memory_space<vmem>>) attributes {dimension_semantics = [#tpu.dimension_semantics<parallel>, #tpu.dimension_semantics<arbitrary>], iteration_bounds = array<i64: 1, 1>, scalar_prefetch = 0 : i64, scratch_operands = 3 : i64, tpu.core_type = #tpu.core_type<tc>, window_params = [{transform_indices = @transform_0, window_bounds = array<i64: 8, 16>}, {transform_indices = @transform_1, window_bounds = array<i64: 8, 16>}, {transform_indices = @transform_2, window_bounds = array<i64: 8, 16>}, {pipeline_mode = #tpu.pipeline_mode<synchronous>, transform_indices = @transform_3, window_bounds = array<i64: 16, 32>}, {pipeline_mode = #tpu.pipeline_mode<synchronous>, transform_indices = @transform_4, window_bounds = array<i64: 16, 32>}, {pipeline_mode = #tpu.pipeline_mode<synchronous>, transform_indices = @transform_5, window_bounds = array<i64: 1, 32>}, {pipeline_mode = #tpu.pipeline_mode<synchronous>, transform_indices = @transform_6, window_bounds = array<i64: 1, 32>}, {transform_indices = @transform_7, window_bounds = array<i64: 1, 1, 32>}, {transform_indices = @transform_8, window_bounds = array<i64: 1, 1, 1>}, {transform_indices = @transform_9, window_bounds = array<i64: 1, 1, 1>}]} {
    %c0_i32 = arith.constant 0 : i32
    %0 = arith.cmpi eq, %arg1, %c0_i32 : i32
    %1 = arith.extui %0 : i1 to i32
    %c0_i32_0 = arith.constant 0 : i32
    %2 = arith.cmpi ne, %1, %c0_i32_0 : i32
    scf.if %2 {
      %cst_42 = arith.constant 0.000000e+00 : f32
      %68 = vector.broadcast %cst_42 : f32 to vector<1x32xf32>
      %c0_43 = arith.constant 0 : index
      %c0_44 = arith.constant 0 : index
      %69 = vector.load %arg12[%c0_43, %c0_44] : memref<1x32xf32, #tpu.memory_space<vmem>>, vector<1x32xf32>
      tpu.vector_store %arg12[%c0_43, %c0_44], %68 {strides = array<i32>} : memref<1x32xf32, #tpu.memory_space<vmem>>, vector<1x32xf32>,
      %cst_45 = arith.constant -1.000000e+30 : f32
      %70 = vector.broadcast %cst_45 : f32 to vector<1x1xf32>
      %c0_46 = arith.constant 0 : index
      %c0_47 = arith.constant 0 : index
      %71 = vector.load %arg13[%c0_46, %c0_47] : memref<1x1xf32, #tpu.memory_space<vmem>>, vector<1x1xf32>
      tpu.vector_store %arg13[%c0_46, %c0_47], %70 {strides = array<i32>} : memref<1x1xf32, #tpu.memory_space<vmem>>, vector<1x1xf32>,
      %cst_48 = arith.constant 0.000000e+00 : f32
      %72 = vector.broadcast %cst_48 : f32 to vector<1x1xf32>
      %c0_49 = arith.constant 0 : index
      %c0_50 = arith.constant 0 : index
      %73 = vector.load %arg14[%c0_49, %c0_50] : memref<1x1xf32, #tpu.memory_space<vmem>>, vector<1x1xf32>
      tpu.vector_store %arg14[%c0_49, %c0_50], %72 {strides = array<i32>} : memref<1x1xf32, #tpu.memory_space<vmem>>, vector<1x1xf32>,
    } else {
    }
    %3 = tpu.iota {dimensions = array<i32: 0>} : vector<8x1xi32>
    %c1_i32 = arith.constant 1 : i32
    %4 = arith.muli %arg0, %c1_i32 : i32
    %5 = arith.addi %4, %arg1 : i32
    %c8_i32 = arith.constant 8 : i32
    %6 = arith.muli %5, %c8_i32 : i32
    %7 = vector.broadcast %6 : i32 to vector<8x1xi32>
    %8 = arith.addi %7, %3 : vector<8x1xi32>
    %c8_i32_1 = arith.constant 8 : i32
    %9 = vector.broadcast %c8_i32_1 : i32 to vector<8x1xi32>
    %10 = arith.cmpi slt, %8, %9 : vector<8x1xi32>
    %c0 = arith.constant 0 : index
    %c0_2 = arith.constant 0 : index
    %11 = vector.load %arg2[%c0, %c0_2] : memref<8x16xf32, #tpu.memory_space<vmem>>, vector<8x16xf32>
    %c0_3 = arith.constant 0 : index
    %c0_4 = arith.constant 0 : index
    %12 = vector.load %arg5[%c0_3, %c0_4] : memref<16x32xf32, #tpu.memory_space<vmem>>, vector<16x32xf32>
    %cst = arith.constant dense<0.000000e+00> : vector<8x32xf32>
    %13 = tpu.matmul %11, %12, %cst {dimension_numbers = #tpu.dot_dimension_numbers<[1], [0], [0], [1], [0, 0, 1, 1], [], []>} : vector<8x16xf32>, vector<16x32xf32>, vector<8x32xf32> -> vector<8x32xf32>
    %c0_5 = arith.constant 0 : index
    %c0_6 = arith.constant 0 : index
    %14 = vector.load %arg7[%c0_5, %c0_6] : memref<1x32xf32, #tpu.memory_space<vmem>>, vector<1x32xf32>
    %c0_7 = arith.constant 0 : index
    %c0_8 = arith.constant 0 : index
    %15 = vector.load %arg3[%c0_7, %c0_8] : memref<8x16xf32, #tpu.memory_space<vmem>>, vector<8x16xf32>
    %c0_9 = arith.constant 0 : index
    %c0_10 = arith.constant 0 : index
    %16 = vector.load %arg6[%c0_9, %c0_10] : memref<16x32xf32, #tpu.memory_space<vmem>>, vector<16x32xf32>
    %cst_11 = arith.constant dense<0.000000e+00> : vector<8x32xf32>
    %17 = tpu.matmul %15, %16, %cst_11 {dimension_numbers = #tpu.dot_dimension_numbers<[1], [0], [0], [1], [0, 0, 1, 1], [], []>} : vector<8x16xf32>, vector<16x32xf32>, vector<8x32xf32> -> vector<8x32xf32>
    %18 = arith.addf %13, %17 : vector<8x32xf32>
    %19 = vector.broadcast %14 : vector<1x32xf32> to vector<8x32xf32>
    %20 = arith.addf %18, %19 : vector<8x32xf32>
    %cst_12 = arith.constant 0.000000e+00 : f32
    %21 = vector.broadcast %cst_12 : f32 to vector<8x32xf32>
    %22 = arith.maximumf %20, %21 : vector<8x32xf32>
    %c0_13 = arith.constant 0 : index
    %c0_14 = arith.constant 0 : index
    %23 = vector.load %arg4[%c0_13, %c0_14] : memref<8x16xf32, #tpu.memory_space<vmem>>, vector<8x16xf32>
    %c0_15 = arith.constant 0 : index
    %c0_16 = arith.constant 0 : index
    %24 = vector.load %arg6[%c0_15, %c0_16] : memref<16x32xf32, #tpu.memory_space<vmem>>, vector<16x32xf32>
    %cst_17 = arith.constant dense<0.000000e+00> : vector<8x32xf32>
    %25 = tpu.matmul %23, %24, %cst_17 {dimension_numbers = #tpu.dot_dimension_numbers<[1], [0], [0], [1], [0, 0, 1, 1], [], []>} : vector<8x16xf32>, vector<16x32xf32>, vector<8x32xf32> -> vector<8x32xf32>
    %26 = arith.addf %13, %25 : vector<8x32xf32>
    %27 = vector.broadcast %14 : vector<1x32xf32> to vector<8x32xf32>
    %28 = arith.addf %26, %27 : vector<8x32xf32>
    %cst_18 = arith.constant 0.000000e+00 : f32
    %29 = vector.broadcast %cst_18 : f32 to vector<8x32xf32>
    %30 = arith.maximumf %28, %29 : vector<8x32xf32>
    %c0_19 = arith.constant 0 : index
    %c0_20 = arith.constant 0 : index
    %31 = vector.load %arg12[%c0_19, %c0_20] : memref<1x32xf32, #tpu.memory_space<vmem>>, vector<1x32xf32>
    %cst_21 = arith.constant 0.000000e+00 : f32
    %32 = vector.shape_cast %10 : vector<8x1xi1> to vector<8x1xi1>
    %33 = vector.broadcast %32 : vector<8x1xi1> to vector<8x32xi1>
    %34 = vector.broadcast %cst_21 : f32 to vector<8x32xf32>
    %35 = arith.select %33, %22, %34 : vector<8x32xi1>, vector<8x32xf32>
    %cst_22 = arith.constant dense<0.000000e+00> : vector<32xf32>
    %36 = vector.multi_reduction <add>, %35, %cst_22 [0] : vector<8x32xf32> to vector<32xf32>
    %37 = vector.shape_cast %36 : vector<32xf32> to vector<1x32xf32>
    %38 = arith.addf %31, %37 : vector<1x32xf32>
    %c0_23 = arith.constant 0 : index
    %c0_24 = arith.constant 0 : index
    %39 = vector.load %arg12[%c0_23, %c0_24] : memref<1x32xf32, #tpu.memory_space<vmem>>, vector<1x32xf32>
    tpu.vector_store %arg12[%c0_23, %c0_24], %38 {strides = array<i32>} : memref<1x32xf32, #tpu.memory_space<vmem>>, vector<1x32xf32>,
    %c0_25 = arith.constant 0 : index
    %c0_26 = arith.constant 0 : index
    %40 = vector.load %arg8[%c0_25, %c0_26] : memref<1x32xf32, #tpu.memory_space<vmem>>, vector<1x32xf32>
    %41 = vector.broadcast %40 : vector<1x32xf32> to vector<8x32xf32>
    %42 = arith.mulf %30, %41 : vector<8x32xf32>
    %cst_27 = arith.constant dense<0.000000e+00> : vector<8xf32>
    %43 = vector.multi_reduction <add>, %42, %cst_27 [1] : vector<8x32xf32> to vector<8xf32>
    %44 = vector.shape_cast %43 : vector<8xf32> to vector<8x1xf32>
    %cst_28 = arith.constant -1.000000e+30 : f32
    %45 = vector.broadcast %cst_28 : f32 to vector<8x1xf32>
    %46 = arith.select %10, %44, %45 : vector<8x1xi1>, vector<8x1xf32>
    %c0_29 = arith.constant 0 : index
    %c0_30 = arith.constant 0 : index
    %47 = vector.load %arg13[%c0_29, %c0_30] : memref<1x1xf32, #tpu.memory_space<vmem>>, vector<1x1xf32>
    %cst_31 = arith.constant dense<0xFF800000> : vector<1xf32>
    %48 = vector.multi_reduction <maximumf>, %46, %cst_31 [0] : vector<8x1xf32> to vector<1xf32>
    %49 = vector.shape_cast %48 : vector<1xf32> to vector<1x1xf32>
    %50 = arith.maximumf %47, %49 : vector<1x1xf32>
    %51 = arith.subf %47, %50 : vector<1x1xf32>
    %52 = math.exp %51 : vector<1x1xf32>
    %53 = vector.broadcast %50 : vector<1x1xf32> to vector<8x1xf32>
    %54 = arith.subf %44, %53 : vector<8x1xf32>
    %55 = math.exp %54 : vector<8x1xf32>
    %cst_32 = arith.constant 0.000000e+00 : f32
    %56 = vector.broadcast %cst_32 : f32 to vector<8x1xf32>
    %57 = arith.select %10, %55, %56 : vector<8x1xi1>, vector<8x1xf32>
    %cst_33 = arith.constant dense<0.000000e+00> : vector<1xf32>
    %58 = vector.multi_reduction <add>, %57, %cst_33 [0] : vector<8x1xf32> to vector<1xf32>
    %59 = vector.shape_cast %58 : vector<1xf32> to vector<1x1xf32>
    %c0_34 = arith.constant 0 : index
    %c0_35 = arith.constant 0 : index
    %60 = vector.load %arg14[%c0_34, %c0_35] : memref<1x1xf32, #tpu.memory_space<vmem>>, vector<1x1xf32>
    %61 = arith.mulf %60, %52 : vector<1x1xf32>
    %62 = arith.addf %61, %59 : vector<1x1xf32>
    %c0_36 = arith.constant 0 : index
    %c0_37 = arith.constant 0 : index
    %63 = vector.load %arg14[%c0_36, %c0_37] : memref<1x1xf32, #tpu.memory_space<vmem>>, vector<1x1xf32>
    tpu.vector_store %arg14[%c0_36, %c0_37], %62 {strides = array<i32>} : memref<1x1xf32, #tpu.memory_space<vmem>>, vector<1x1xf32>,
    %c0_38 = arith.constant 0 : index
    %c0_39 = arith.constant 0 : index
    %64 = vector.load %arg13[%c0_38, %c0_39] : memref<1x1xf32, #tpu.memory_space<vmem>>, vector<1x1xf32>
    tpu.vector_store %arg13[%c0_38, %c0_39], %50 {strides = array<i32>} : memref<1x1xf32, #tpu.memory_space<vmem>>, vector<1x1xf32>,
    %c0_i32_40 = arith.constant 0 : i32
    %65 = arith.cmpi eq, %arg1, %c0_i32_40 : i32
    %66 = arith.extui %65 : i1 to i32
    %c0_i32_41 = arith.constant 0 : i32
    %67 = arith.cmpi ne, %66, %c0_i32_41 : i32
    scf.if %67 {
      %c0_42 = arith.constant 0 : index
      %c0_43 = arith.constant 0 : index
      %68 = vector.load %arg12[%c0_42, %c0_43] : memref<1x32xf32, #tpu.memory_space<vmem>>, vector<1x32xf32>
      %c0_44 = arith.constant 0 : index
      %c0_45 = arith.constant 0 : index
      %c0_46 = arith.constant 0 : index
      %69 = vector.load %arg9[%c0_44, %c0_45, %c0_46] : memref<1x1x32xf32, #tpu.memory_space<vmem>>, vector<1x1x32xf32>
      %70 = vector.shape_cast %69 : vector<1x1x32xf32> to vector<1x32xf32>
      %71 = vector.shape_cast %68 : vector<1x32xf32> to vector<1x1x32xf32>
      tpu.vector_store %arg9[%c0_44, %c0_45, %c0_46], %71 {strides = array<i32>} : memref<1x1x32xf32, #tpu.memory_space<vmem>>, vector<1x1x32xf32>,
      %c0_47 = arith.constant 0 : index
      %c0_48 = arith.constant 0 : index
      %72 = vector.load %arg13[%c0_47, %c0_48] : memref<1x1xf32, #tpu.memory_space<vmem>>, vector<1x1xf32>
      %c0_49 = arith.constant 0 : index
      %c0_50 = arith.constant 0 : index
      %c0_51 = arith.constant 0 : index
      %73 = vector.load %arg10[%c0_49, %c0_50, %c0_51] : memref<1x1x1xf32, #tpu.memory_space<vmem>>, vector<1x1x1xf32>
      %74 = vector.shape_cast %73 : vector<1x1x1xf32> to vector<1x1xf32>
      %75 = vector.shape_cast %72 : vector<1x1xf32> to vector<1x1x1xf32>
      tpu.vector_store %arg10[%c0_49, %c0_50, %c0_51], %75 {strides = array<i32>} : memref<1x1x1xf32, #tpu.memory_space<vmem>>, vector<1x1x1xf32>,
      %c0_52 = arith.constant 0 : index
      %c0_53 = arith.constant 0 : index
      %76 = vector.load %arg14[%c0_52, %c0_53] : memref<1x1xf32, #tpu.memory_space<vmem>>, vector<1x1xf32>
      %c0_54 = arith.constant 0 : index
      %c0_55 = arith.constant 0 : index
      %c0_56 = arith.constant 0 : index
      %77 = vector.load %arg11[%c0_54, %c0_55, %c0_56] : memref<1x1x1xf32, #tpu.memory_space<vmem>>, vector<1x1x1xf32>
      %78 = vector.shape_cast %77 : vector<1x1x1xf32> to vector<1x1xf32>
      %79 = vector.shape_cast %76 : vector<1x1xf32> to vector<1x1x1xf32>
      tpu.vector_store %arg11[%c0_54, %c0_55, %c0_56], %79 {strides = array<i32>} : memref<1x1x1xf32, #tpu.memory_space<vmem>>, vector<1x1x1xf32>,
    } else {
    }
    return
  }
  func.func @transform_0(%arg0: i32, %arg1: i32) -> (i32, i32) {
    %c1_i32 = arith.constant 1 : i32
    %0 = arith.muli %arg0, %c1_i32 : i32
    %1 = arith.addi %0, %arg1 : i32
    %c0_i32 = arith.constant 0 : i32
    %2 = arith.minsi %1, %c0_i32 : i32
    %c0_i32_0 = arith.constant 0 : i32
    %c0_i32_1 = arith.constant 0 : i32
    return %2, %c0_i32_0 : i32, i32
  }
  func.func @transform_1(%arg0: i32, %arg1: i32) -> (i32, i32) {
    %c1_i32 = arith.constant 1 : i32
    %0 = arith.muli %arg0, %c1_i32 : i32
    %1 = arith.addi %0, %arg1 : i32
    %c0_i32 = arith.constant 0 : i32
    %2 = arith.minsi %1, %c0_i32 : i32
    %c0_i32_0 = arith.constant 0 : i32
    %c0_i32_1 = arith.constant 0 : i32
    return %2, %c0_i32_0 : i32, i32
  }
  func.func @transform_2(%arg0: i32, %arg1: i32) -> (i32, i32) {
    %c1_i32 = arith.constant 1 : i32
    %0 = arith.muli %arg0, %c1_i32 : i32
    %1 = arith.addi %0, %arg1 : i32
    %c0_i32 = arith.constant 0 : i32
    %2 = arith.minsi %1, %c0_i32 : i32
    %c0_i32_0 = arith.constant 0 : i32
    %c0_i32_1 = arith.constant 0 : i32
    return %2, %c0_i32_0 : i32, i32
  }
  func.func @transform_3(%arg0: i32, %arg1: i32) -> (i32, i32) {
    %c0_i32 = arith.constant 0 : i32
    %c0_i32_0 = arith.constant 0 : i32
    %c0_i32_1 = arith.constant 0 : i32
    return %c0_i32, %c0_i32_0 : i32, i32
  }
  func.func @transform_4(%arg0: i32, %arg1: i32) -> (i32, i32) {
    %c0_i32 = arith.constant 0 : i32
    %c0_i32_0 = arith.constant 0 : i32
    %c0_i32_1 = arith.constant 0 : i32
    return %c0_i32, %c0_i32_0 : i32, i32
  }
  func.func @transform_5(%arg0: i32, %arg1: i32) -> (i32, i32) {
    %c0_i32 = arith.constant 0 : i32
    %c0_i32_0 = arith.constant 0 : i32
    %c0_i32_1 = arith.constant 0 : i32
    return %c0_i32, %c0_i32_0 : i32, i32
  }
  func.func @transform_6(%arg0: i32, %arg1: i32) -> (i32, i32) {
    %c0_i32 = arith.constant 0 : i32
    %c0_i32_0 = arith.constant 0 : i32
    %c0_i32_1 = arith.constant 0 : i32
    return %c0_i32, %c0_i32_0 : i32, i32
  }
  func.func @transform_7(%arg0: i32, %arg1: i32) -> (i32, i32, i32) {
    %c0_i32 = arith.constant 0 : i32
    %c0_i32_0 = arith.constant 0 : i32
    %c0_i32_1 = arith.constant 0 : i32
    return %arg0, %c0_i32, %c0_i32_0 : i32, i32, i32
  }
  func.func @transform_8(%arg0: i32, %arg1: i32) -> (i32, i32, i32) {
    %c0_i32 = arith.constant 0 : i32
    %c0_i32_0 = arith.constant 0 : i32
    %c0_i32_1 = arith.constant 0 : i32
    return %arg0, %c0_i32, %c0_i32_0 : i32, i32, i32
  }
  func.func @transform_9(%arg0: i32, %arg1: i32) -> (i32, i32, i32) {
    %c0_i32 = arith.constant 0 : i32
    %c0_i32_0 = arith.constant 0 : i32
    %c0_i32_1 = arith.constant 0 : i32
    return %arg0, %c0_i32, %c0_i32_0 : i32, i32, i32
  }
}

</mosaic_0001>

<bundles_post_ra>
// kernel: tpu_custom_call.1
= control target key start
LH: loop header
LB: loop body
LE: loop exit
PB: predicated region body
PF: predicated region fallthrough
CT: control target
= control target key end

     0   :  { %15 = vsyncpa [#allocation6], 0  ;;  %s933_s0 = inlined_call_operand.hbm [shape: f32[8,16], index: 0, kind: input, shape index: {}]   ;;  %s934_s1 = inlined_call_operand.hbm [shape: f32[8,16], index: 1, kind: input, shape index: {}]   ;;  %s935_s2 = inlined_call_operand.hbm [shape: f32[8,16], index: 2, kind: input, shape index: {}]   ;;  %s936_s3 = inlined_call_operand.hbm [shape: f32[16,32], index: 3, kind: input, shape index: {}]   ;;  %s937_s4 = inlined_call_operand.hbm [shape: f32[16,32], index: 4, kind: input, shape index: {}]   ;;  %s938_s5 = inlined_call_operand.vmem [shape: f32[1,32], index: 5, kind: input, shape index: {}]   ;;  %s939_s6 = inlined_call_operand.vmem [shape: f32[1,32], index: 6, kind: input, shape index: {}]   ;;  %s940_s7 = inlined_call_operand.hbm [shape: f32[1,1,32], index: 7, kind: output, shape index: {0}]   ;;  %s941_s8 = inlined_call_operand.hbm [shape: f32[1,1,1], index: 8, kind: output, shape index: {1}]   ;;  %s942_s9 = inlined_call_operand.hbm [shape: f32[1,1,1], index: 9, kind: output, shape index: {2}]  }
   0x1   :  { %16 = vsyncpa [#allocation9], 0 }
   0x2   :  { %17 = vsyncpa [#allocation12], 0 }
   0x3   :  { %18 = vsyncpa [#allocation7], 0 }
   0x4   :  { %19 = vsyncpa [#allocation16], 0  ;;  %s742_s30 = smov [#allocation8]   ;;  %s743_s11 = smov [#allocation11]  }
   0x5   :  { %s46_s10 = sshll.u32 %s742_s30, 4  ;;  %s70_s12 = sshll.u32 %s743_s11, 4  ;;  %s47_s10 = int_to_ptr.vmem [resolvable:$true] %s46_s10  ;;  %s806_s12 = int_to_ptr.vmem [resolvable:$true] %s70_s12 }
   0x6   :  { %s556_s15 = scalar_lea.hbm %s934_s1, 128 }
   0x7   :  { %p557_p0 = scmp.ne.s32.totalorder %s934_s1, %s556_s15  ;;  %p560_p1 = scmp.lt.u32.totalorder %s556_s15, %s934_s1 }
   0x9   :  { %p562_p2 = pnand %p560_p1, %p557_p0 }
   0xb   :  { %565 = shalt.err (!%p562_p2)
}
   0xc   :  { %s566_s20 = scalar_lea.vmem %s47_s10, 128  ;;  %p571_p4 = scmp.lt.s32.totalorder %s47_s10, %s47_s10 }
   0xd   :  { %p567_p3 = scmp.ne.s32.totalorder %s47_s10, %s566_s20  ;;  %p572_p5 = scmp.lt.s32.totalorder %s566_s20, %s566_s20 }
   0xf   :  { %p573_p6 = por %p572_p5, %p571_p4 }
  0x11   :  { %p574_p7 = pnand %p573_p6, %p567_p3 }
  0x13   :  { %577 = shalt.err (!%p574_p7)
}
  0x14   :  { %49 = dma.hbm_to_vmem [thread:$0]  %s934_s1, 128, %s47_s10, [#allocation9]  }
  0x15   :  { %s578_s25 = scalar_lea.hbm %s936_s3, 256 }
  0x16   :  { %p579_p8 = scmp.ne.s32.totalorder %s936_s3, %s578_s25  ;;  %p582_p9 = scmp.lt.u32.totalorder %s578_s25, %s936_s3 }
  0x18   :  { %p584_p10 = pnand %p582_p9, %p579_p8 }
  0x1a   :  { %587 = shalt.err (!%p584_p10)
}
  0x1b   :  { %s588_s30 = scalar_lea.vmem %s806_s12, 256  ;;  %p593_p12 = scmp.lt.s32.totalorder %s806_s12, %s806_s12 }
  0x1c   :  { %p589_p11 = scmp.ne.s32.totalorder %s806_s12, %s588_s30  ;;  %p594_p13 = scmp.lt.s32.totalorder %s588_s30, %s588_s30 }
  0x1e   :  { %p595_p0 = por %p594_p13, %p593_p12 }
  0x20   :  { %p596_p1 = pnand %p595_p0, %p589_p11 }
  0x22   :  { %599 = shalt.err (!%p596_p1)
}
  0x23   :  { %s744_s1 = smov 128   ;;  %s745_s10 = smov 8  }
  0x24   :  { %76 = dma.hbm_to_vmem [thread:$0]  %s936_s3, 256, %s806_s12, [#allocation12], %s744_s1, %s744_s1, %s745_s10  }
  0x25   :  { %s746_s14 = smov [#allocation5]   ;;  %s747_s16 = smov [#allocation10]  }
  0x26   :  { %s31_s15 = sshll.u32 %s746_s14, 4  ;;  %s61_s17 = sshll.u32 %s747_s16, 4  ;;  %s32_s15 = int_to_ptr.vmem [resolvable:$true] %s31_s15  ;;  %s62_s17 = int_to_ptr.vmem [resolvable:$true] %s61_s17 }
  0x27   :  { %s600_s20 = scalar_lea.hbm %s933_s0, 128 }
  0x28   :  { %p601_p2 = scmp.ne.s32.totalorder %s933_s0, %s600_s20  ;;  %p604_p3 = scmp.lt.u32.totalorder %s600_s20, %s933_s0 }
  0x2a   :  { %p606_p4 = pnand %p604_p3, %p601_p2 }
  0x2c   :  { %609 = shalt.err (!%p606_p4)
}
  0x2d   :  { %s610_s3 = scalar_lea.vmem %s32_s15, 128  ;;  %p615_p6 = scmp.lt.s32.totalorder %s32_s15, %s32_s15 }
  0x2e   :  { %p611_p5 = scmp.ne.s32.totalorder %s32_s15, %s610_s3  ;;  %p616_p7 = scmp.lt.s32.totalorder %s610_s3, %s610_s3 }
  0x30   :  { %p617_p8 = por %p616_p7, %p615_p6 }
  0x32   :  { %p618_p9 = pnand %p617_p8, %p611_p5 }
  0x34   :  { %621 = shalt.err (!%p618_p9)
}
  0x35   :  { %34 = dma.hbm_to_vmem [thread:$0]  %s933_s0, 128, %s32_s15, [#allocation6]  }
  0x36   :  { %s622_s28 = scalar_lea.hbm %s935_s2, 128 }
  0x37   :  { %p623_p10 = scmp.ne.s32.totalorder %s935_s2, %s622_s28  ;;  %p626_p11 = scmp.lt.u32.totalorder %s622_s28, %s935_s2 }
  0x39   :  { %p628_p12 = pnand %p626_p11, %p623_p10 }
  0x3b   :  { %631 = shalt.err (!%p628_p12)
}
  0x3c   :  { %s632_s14 = scalar_lea.vmem %s62_s17, 128  ;;  %p637_p0 = scmp.lt.s32.totalorder %s62_s17, %s62_s17 }
  0x3d   :  { %p633_p13 = scmp.ne.s32.totalorder %s62_s17, %s632_s14  ;;  %p638_p1 = scmp.lt.s32.totalorder %s632_s14, %s632_s14 }
  0x3f   :  { %p639_p2 = por %p638_p1, %p637_p0 }
  0x41   :  { %p640_p3 = pnand %p639_p2, %p633_p13 }
  0x43   :  { %643 = shalt.err (!%p640_p3)
}
  0x44   :  { %64 = dma.hbm_to_vmem [thread:$0]  %s935_s2, 128, %s62_s17, [#allocation9]  }
  0x45   :  { %s748_s16 = smov [#allocation13]   ;;  %s644_s21 = scalar_lea.hbm %s937_s4, 256 }
  0x46   :  { %s82_s18 = sshll.u32 %s748_s16, 4  ;;  %p645_p4 = scmp.ne.s32.totalorder %s937_s4, %s644_s21  ;;  %s83_s18 = int_to_ptr.vmem [resolvable:$true] %s82_s18 }
  0x47   :  { %p648_p5 = scmp.lt.u32.totalorder %s644_s21, %s937_s4 }
  0x49   :  { %p650_p6 = pnand %p648_p5, %p645_p4 }
  0x4b   :  { %653 = shalt.err (!%p650_p6)
}
  0x4c   :  { %s654_s12 = scalar_lea.vmem %s83_s18, 256  ;;  %p659_p8 = scmp.lt.s32.totalorder %s83_s18, %s83_s18 }
  0x4d   :  { %p655_p7 = scmp.ne.s32.totalorder %s83_s18, %s654_s12  ;;  %p660_p9 = scmp.lt.s32.totalorder %s654_s12, %s654_s12 }
  0x4f   :  { %p661_p10 = por %p660_p9, %p659_p8 }
  0x51   :  { %p662_p11 = pnand %p661_p10, %p655_p7 }
  0x53   :  { %665 = shalt.err (!%p662_p11)
}
  0x54   :  { %88 = dma.hbm_to_vmem [thread:$0]  %s937_s4, 256, %s83_s18, [#allocation12], %s744_s1, %s744_s1, %s745_s10  }
  0x55   :  { %732 = dma.done.wait [#allocation6], 128  }
  0x56   :  { %733 = vsyncadd [#allocation6], 4294967168 }
  0x57   :  { %734 = dma.done.wait [#allocation9], 256  }
  0x58   :  { %735 = vsyncadd [#allocation9], 4294967040 }
  0x59   :  { %736 = dma.done.wait [#allocation12], 512  }
  0x5a   :  { %737 = vsyncadd [#allocation12], 4294966784  ;;  %v749_v0 = vmov 0.0|0.0   ;;  %vm750_vm0 = vmmov 0   ;;  %v751_v1 = vmov 0.0   ;;  %v134_v2 = vld [vmem:[#allocation11] sm:$0xff] }
  0x5b   :  { %529 = vmatprep.subr.bf16.mxu0 %v749_v0  ;;  %532 = vmatprep.subr.bf16.mxu1 %v749_v0  ;;  %v135_v3 = vld [vmem:[#allocation11 + $0x8] sm:$0xff]  ;;  %v212_v4 = vld [vmem:[#allocation13] sm:$0xff]  ;;  %v213_v6 = vld [vmem:[#allocation13 + $0x8] sm:$0xff]  ;;  %vm136_vm1 = vcmask 130048   ;;  %vm121_vm2 = vcmask 253952   ;;  %vm123_vm3 = vcmask 0  }
  0x5c   :  { %512 = vmatprep.mubr.msk.f32.mxu0 %vm750_vm0, %v751_v1  ;;  %519 = vmatprep.mubr.msk.f32.mxu1 %vm750_vm0, %v751_v1  ;;  %v530_v5 = vpack.c.bf16 %v135_v3, %v134_v2  ;;  %v533_v7 = vpack.c.bf16 %v213_v6, %v212_v4  ;;  %v133_v8 = vld [vmem:[#allocation5] sm:$0xff]  ;;  %v211_v9 = vld [vmem:[#allocation8] sm:$0xff]  ;;  %v296_v10 = vld [vmem:[#allocation10] sm:$0xff]  ;;  %122 = vst.msk [vmem:[#allocation2] sm:$0x1] %vm121_vm2, %v751_v1  ;;  %vm377_vm4 = vcmask 261120  }
  0x5d   :  { %v752_v11 = vmov -1e+30   ;;  %125 = vst.msk [vmem:[#allocation4] sm:$0x1] %vm123_vm3, %v751_v1  ;;  %v496_v13 = vld [vmem:[%s938_s5] ss:$0 sm:$0xff] }
  0x5e   :  { %531 = vmatpush3.bf16.msra.mxu0 %v530_v5  ;;  %534 = vmatpush3.bf16.msra.mxu1 %v533_v7  ;;  %124 = vst.msk [vmem:[#allocation3] sm:$0x1] %vm123_vm3, %v752_v11  ;;  %v498_v25 = vld [vmem:[%s939_s6] ss:$0 sm:$0xff]  ;;  %s753_s5 = smov [#allocation14]  }
  0x5f   :  { %535 = vmatprep.subr.bf16.mxu0 %v749_v0  ;;  %s450_s26 = sshll.u32 %s753_s5, 4  ;;  %s451_s26 = int_to_ptr.vmem [resolvable:$true] %s450_s26 }
  0x60   :  { %s666_s6 = scalar_lea.vmem %s451_s26, 16  ;;  %s670_s27 = scalar_lea.vmem %s451_s26, 32 }
  0x61   :  { %513 = vmatmul.mubr.msk.f32.vlgmr.msra.gmra.mrb[0].mxu0 %vm136_vm1, %v133_v8  ;;  %520 = vmatmul.mubr.msk.f32.vlgmr.msra.gmra.mrb[0].mxu1 %vm136_vm1, %v211_v9  ;;  %p667_p12 = scmp.ne.s32.totalorder %s451_s26, %s666_s6  ;;  %p671_p13 = scmp.lt.s32.totalorder %s451_s26, %s451_s26 }
  0x62   :  { %537 = vmatpush3.bf16.msra.mxu0 %v533_v7  ;;  %526 = vmatprep.mubr.msk.f32.mxu0 %vm750_vm0, %v751_v1  ;;  %p672_p0 = scmp.lt.s32.totalorder %s670_s27, %s666_s6 }
  0x63   :  { %v373_v34 = vld [vmem:[#allocation2] sm:$0x1] }
  0x64   :  { %p673_p1 = por %p672_p0, %p671_p13 }
  0x65   :  { %527 = vmatmul.mubr.msk.f32.vlgmr.msra.gmra.mrb[2].mxu0 %vm136_vm1, %v296_v10 }
  0x66   :  { %p674_p2 = pnand %p673_p1, %p667_p12 }
 0x134   :  { %v206_v12 = vpop.f32.mrb[0].mxu0  ;;  %v283_v14 = vpop.f32.mrb[0].mxu1 }
 0x135   :  { %v514_v15 = vpop.f32.mrb[1].mxu0  ;;  %v287_v16 = vadd.f32 %v283_v14, %v206_v12  ;;  %v521_v17 = vpop.f32.mrb[1].mxu1 }
 0x137   :  { %v294_v18 = vadd.f32 %v496_v13, %v287_v16 }
 0x138   :  { %v366_v19 = vpop.f32.mrb[2].mxu0 }
 0x139   :  { %v370_v20 = vadd.f32 %v366_v19, %v206_v12  ;;  %v528_v21 = vpop.f32.mrb[3].mxu0  ;;  %v295_v22 = vmax.f32 %v294_v18, 0.0 }
 0x13b   :  { %v371_v23 = vadd.f32 %v496_v13, %v370_v20  ;;  %v378_v24 = vsel %vm377_vm4, %v295_v22, 0.0 }
 0x13c   :  { %v379_v27 = vrot.slane %v378_v24, 4 }
 0x13d   :  { %v372_v26 = vmax.f32 %v371_v23, 0.0 }
 0x13e   :  { %v380_v28 = vadd.f32 %v379_v27, %v378_v24 }
 0x13f   :  { %v395_v29 = vmul.f32 %v498_v25, %v372_v26 }
 0x140   :  { %v381_v30 = vrot.slane %v380_v28, 2 }
 0x141   :  { %v396_v31 = vsel %vm377_vm4, %v395_v29, 0.0 }
 0x142   :  { %397 = vadd.xlane.f32.xlu0 %v396_v31  ;;  %v382_v32 = vadd.f32 %v381_v30, %v380_v28 }
 0x144   :  { %v383_v33 = vrot.slane %v382_v32, 1 }
 0x146   :  { %v384_v35 = vadd.f32 %v383_v33, %v382_v32 }
 0x148   :  { %v385_v36 = vadd.f32 %v384_v35, %v373_v34 }
 0x14a   :  { %387 = vst.msk [vmem:[#allocation2] sm:$0x1] %vm121_vm2, %v385_v36 }
 0x151   :  { %v438_v37 = vld [vmem:[#allocation2] sm:$0x1] }
 0x152   :  { %439 = vst.msk [vmem:[#allocation14] sm:$0x1] %vm121_vm2, %v438_v37 }
 0x153   :  { %677 = shalt.err (!%p674_p2)
}
 0x154   :  { %s678_s30 = scalar_lea.hbm %s940_s7, 16 }
 0x155   :  { %p679_p3 = scmp.ne.s32.totalorder %s940_s7, %s678_s30  ;;  %p682_p4 = scmp.lt.u32.totalorder %s678_s30, %s940_s7 }
 0x157   :  { %p684_p5 = pnand %p682_p4, %p679_p3 }
 0x159   :  { %687 = shalt.err (!%p684_p5)
}
 0x15a   :  { %453 = dma.vmem_to_hbm [thread:$0]  %s451_s26, 16, %s940_s7, [#allocation7]   ;;  %v412_v41 = vlaneseq  ;;  %v400_v46 = vld [vmem:[#allocation3] sm:$0x1] }
 0x15b   :  { %s754_s18 = smov [#allocation15]  }
 0x15c   :  { %v413_v44 = vshrl.u32 %v412_v41, 7  ;;  %s460_s19 = sshll.u32 %s754_s18, 4  ;;  %s461_s19 = int_to_ptr.vmem [resolvable:$true] %s460_s19 }
 0x15d   :  { %s688_s7 = scalar_lea.vmem %s461_s19, 16  ;;  %s692_s20 = scalar_lea.vmem %s461_s19, 32 }
 0x15e   :  { %v414_v48 = vsub.s32 0, %v413_v44  ;;  %p689_p6 = scmp.ne.s32.totalorder %s461_s19, %s688_s7  ;;  %p693_p7 = scmp.lt.s32.totalorder %s461_s19, %s461_s19 }
 0x15f   :  { %p694_p8 = scmp.lt.s32.totalorder %s692_s20, %s688_s7 }
 0x161   :  { %p695_p9 = por %p694_p8, %p693_p7 }
 0x163   :  { %p696_p10 = pnand %p695_p9, %p689_p6 }
 0x1cf   :  { %v398_v38 = vpop.xlane.xlu0 %397 }
 0x1d0   :  { %v401_v39 = vrot.slane %v398_v38, 4 }
 0x1d2   :  { %v402_v40 = vmax.f32 %v398_v38, %v401_v39 }
 0x1d4   :  { %v403_v42 = vrot.slane %v402_v40, 2 }
 0x1d6   :  { %v404_v43 = vmax.f32 %v402_v40, %v403_v42 }
 0x1d8   :  { %v405_v45 = vrot.slane %v404_v43, 1 }
 0x1da   :  { %v406_v47 = vmax.f32 %v404_v43, %v405_v45 }
 0x1dc   :  { %v407_v49 = vmax.f32 %v400_v46, %v406_v47 }
 0x1de   :  { %v415_v50 = vrot.slane %v407_v49, %v414_v48  ;;  %434 = vst.msk [vmem:[#allocation3] sm:$0x1] %vm123_vm3, %v407_v49  ;;  %v408_v53 = vsub.f32 %v400_v46, %v407_v49 }
 0x1e0   :  { %v417_v51 = vsub.f32 %v398_v38, %v415_v50 }
 0x1e2   :  { %v418_v52 = vmul.f32 1.442695, %v417_v51 }
 0x1e4   :  { %552 = vpow2.f32 %v418_v52 }
 0x1e5   :  { %v440_v54 = vld [vmem:[#allocation3] sm:$0x1] }
 0x1e6   :  { %441 = vst.msk [vmem:[#allocation15] sm:$0x1] %vm123_vm3, %v440_v54 }
 0x1e7   :  { %699 = shalt.err (!%p696_p10)
}
 0x1e8   :  { %s700_s23 = scalar_lea.hbm %s941_s8, 16 }
 0x1e9   :  { %p701_p11 = scmp.ne.s32.totalorder %s941_s8, %s700_s23  ;;  %p704_p12 = scmp.lt.u32.totalorder %s700_s23, %s941_s8 }
 0x1eb   :  { %p706_p13 = pnand %p704_p12, %p701_p11 }
 0x1ed   :  { %709 = shalt.err (!%p706_p13)
}
 0x1ee   :  { %463 = dma.vmem_to_hbm [thread:$0]  %s461_s19, 16, %s941_s8, [#allocation16]   ;;  %v409_v55 = vmul.f32 1.442695, %v408_v53  ;;  %vm421_vm5 = vcmask 7168   ;;  %v553_v56 = vpop.eup %552 }
 0x1ef   :  { %v422_v57 = vsel %vm421_vm5, %v553_v56, 0.0  ;;  %v429_v63 = vld [vmem:[#allocation4] sm:$0x1]  ;;  %s755_s1 = smov [#allocation17]  }
 0x1f0   :  { %554 = vpow2.f32 %v409_v55  ;;  %v423_v58 = vrot.slane %v422_v57, 4  ;;  %s470_s10 = sshll.u32 %s755_s1, 4  ;;  %s471_s10 = int_to_ptr.vmem [resolvable:$true] %s470_s10 }
 0x1f1   :  { %s710_s8 = scalar_lea.vmem %s471_s10, 16  ;;  %s714_s25 = scalar_lea.vmem %s471_s10, 32 }
 0x1f2   :  { %v424_v59 = vadd.f32 %v423_v58, %v422_v57  ;;  %p711_p0 = scmp.ne.s32.totalorder %s471_s10, %s710_s8  ;;  %p715_p1 = scmp.lt.s32.totalorder %s471_s10, %s471_s10 }
 0x1f3   :  { %p716_p2 = scmp.lt.s32.totalorder %s714_s25, %s710_s8 }
 0x1f4   :  { %v425_v60 = vrot.slane %v424_v59, 2 }
 0x1f5   :  { %p717_p3 = por %p716_p2, %p715_p1 }
 0x1f6   :  { %v426_v61 = vadd.f32 %v425_v60, %v424_v59 }
 0x1f7   :  { %p718_p4 = pnand %p717_p3, %p711_p0 }
 0x1f8   :  { %v427_v0 = vrot.slane %v426_v61, 1 }
 0x1fa   :  { %v555_v62 = vpop.eup %554  ;;  %v428_v1 = vadd.f32 %v427_v0, %v426_v61 }
 0x1fb   :  { %v430_v2 = vmul.f32 %v555_v62, %v429_v63 }
 0x1fd   :  { %v431_v3 = vadd.f32 %v430_v2, %v428_v1 }
 0x1ff   :  { %433 = vst.msk [vmem:[#allocation4] sm:$0x1] %vm123_vm3, %v431_v3 }
 0x206   :  { %v442_v4 = vld [vmem:[#allocation4] sm:$0x1] }
 0x207   :  { %443 = vst.msk [vmem:[#allocation17] sm:$0x1] %vm123_vm3, %v442_v4 }
 0x208   :  { %721 = shalt.err (!%p718_p4)
}
 0x209   :  { %s722_s6 = scalar_lea.hbm %s942_s9, 16 }
 0x20a   :  { %p723_p5 = scmp.ne.s32.totalorder %s942_s9, %s722_s6  ;;  %p726_p6 = scmp.lt.u32.totalorder %s722_s6, %s942_s9 }
 0x20c   :  { %p728_p7 = pnand %p726_p6, %p723_p5 }
 0x20e   :  { %731 = shalt.err (!%p728_p7)
}
 0x20f   :  { %473 = dma.vmem_to_hbm [thread:$0]  %s471_s10, 16, %s942_s9, [#allocation16]  }
 0x210   :  { %738 = dma.done.wait [#allocation7], 16  }
 0x211   :  { %739 = vsyncadd [#allocation7], 4294967280 }
 0x212   :  { %740 = dma.done.wait [#allocation16], 32  }
 0x213   :  { %741 = vsyncadd [#allocation16], 4294967264 }
 0x214   :  { %483 = vsyncpa [#allocation6], 1 }
 0x215   :  { %484 = vsyncpa [#allocation9], 1 }
 0x216   :  { %485 = vsyncpa [#allocation12], 1 }
 0x217   :  { %486 = vsyncpa [#allocation7], 1 }
 0x218   :  { %487 = vsyncpa [#allocation16], 1 }

</bundles_post_ra>
